<compile_context>
chip_gen: v5e
topology: v5e:2x2
jax: 0.10.0
libtpu: 0.0.40
codegen_flags: <defaults>
</compile_context>

<pallas_src>
import functools

import jax
import jax.numpy as jnp
import numpy as np
from jax.experimental import pallas as pl
from jax.experimental.pallas import tpu as pltpu


def _round_up(v, m):
    return (v + m - 1) // m * m


# ---------------------------------------------------------------------------
# Kernel A: per node tile, h_n = relu([x|h_e] @ Wi + bi); accumulate
#           m = sum_n bond[n] * h_n[n, :] across node tiles (resident output).
# ---------------------------------------------------------------------------
def dmpnn_hn_kernel(xh_ref, bond_ref, wi_ref, bi_ref, hn_ref, m_ref):
    @pl.when(pl.program_id(0) == 0)
    def _init():
        m_ref[...] = jnp.zeros_like(m_ref)

    h_n = jnp.dot(xh_ref[...], wi_ref[...], preferred_element_type=jnp.float32)
    h_n = jnp.maximum(h_n + bi_ref[...], 0.0)            # [tile_m, Ep] f32
    hn_ref[...] = h_n
    # VPU multiply + sublane reduce (avoids a 1-row MXU matmul).
    m_ref[...] += jnp.sum(h_n * bond_ref[...], axis=0, keepdims=True)


# ---------------------------------------------------------------------------
# Kernel B: per node tile, h = relu(h_n + W_m(m) + b_m).
# ---------------------------------------------------------------------------
def dmpnn_out_kernel(hn_ref, m_ref, wm_ref, bm_ref, h_ref):
    wm_m = jnp.dot(m_ref[...], wm_ref[...], preferred_element_type=jnp.float32)
    wm_m = wm_m + bm_ref[...]                             # [1, Ep]
    h_ref[...] = jnp.maximum(hn_ref[...] + wm_m, 0.0)


# ---------------------------------------------------------------------------
# One-time parameter preparation: keep ONLY the last layer (dead-layer
# elimination), transpose, zero-pad to lane width, cast W_i to bf16.
# ---------------------------------------------------------------------------
def prepare_params(raw_params, emb_dim):
    E = emb_dim
    e_pad = _round_up(E, 128)
    k_pad = _round_up(2 * E, 128)
    # x / h_e never change across layers in the source model, so layers
    # 0..L-2 cannot affect the returned h: use only the last layer's weights.
    w_i, b_i, w_m, b_m = raw_params["layers"][-1]
    wi = jnp.zeros((k_pad, e_pad), jnp.float32).at[: 2 * E, :E].set(w_i.T)
    bi = jnp.zeros((1, e_pad), jnp.float32).at[0, :E].set(b_i)
    wm = jnp.zeros((e_pad, e_pad), jnp.float32).at[:E, :E].set(w_m.T)
    bm = jnp.zeros((1, e_pad), jnp.float32).at[0, :E].set(b_m)
    return {
        "atom_emb": raw_params["atom_emb"],
        "bond_emb": raw_params["bond_emb"],
        "wi": wi.astype(jnp.bfloat16),
        "bi": bi,
        "wm": wm,
        "bm": bm,
    }


# ---------------------------------------------------------------------------
# Encoder forward: embedding gathers + packing in XLA, conv in two kernels.
# ---------------------------------------------------------------------------
@functools.partial(jax.jit, static_argnames=("emb_dim",))
def dmpnn_encoder_forward(prepped, x_idx, edge_idx, bond_n, emb_dim):
    E = emb_dim
    k_pad, e_pad = prepped["wi"].shape

    x_emb = prepped["atom_emb"][x_idx]           # [N, 2, E]
    x = x_emb[:, 0] + x_emb[:, 1]                # [N, E]
    e_emb = prepped["bond_emb"][edge_idx]        # [N, 2, E]
    h_e = e_emb[:, 0] + e_emb[:, 1]              # [N, E]

    N = x.shape[0]
    tile_m = min(256, _round_up(N, 16))          # multiple of 16 (bf16 sublanes)
    n_pad = _round_up(N, tile_m)
    n_tiles = n_pad // tile_m

    # Pack [x | h_e] into one 128-lane K block (single concat + pad), bf16.
    xh = jnp.concatenate([x, h_e], axis=1)                          # [N, 2E]
    xh = jnp.pad(xh, ((0, n_pad - N), (0, k_pad - 2 * E))).astype(jnp.bfloat16)

    # bond_n pre-reduced over its batch axis, laid out as a column vector.
    bond_col = jnp.pad(jnp.sum(bond_n, axis=0)[:, None],
                       ((0, n_pad - N), (0, 0))).astype(jnp.float32)

    # Phase 1: h_n per node tile + m accumulated across node tiles.
    hn, m = pl.pallas_call(
        dmpnn_hn_kernel,
        out_shape=(
            jax.ShapeDtypeStruct((n_pad, e_pad), jnp.float32),
            jax.ShapeDtypeStruct((1, e_pad), jnp.float32),
        ),
        grid_spec=pltpu.PrefetchScalarGridSpec(
            num_scalar_prefetch=0,
            grid=(n_tiles,),
            in_specs=[
                pl.BlockSpec((tile_m, k_pad), lambda t: (t, 0)),   # xh tile
                pl.BlockSpec((tile_m, 1), lambda t: (t, 0)),       # bond column
                pl.BlockSpec((k_pad, e_pad), lambda t: (0, 0)),    # W_i (resident)
                pl.BlockSpec((1, e_pad), lambda t: (0, 0)),        # b_i (resident)
            ],
            out_specs=[
                pl.BlockSpec((tile_m, e_pad), lambda t: (t, 0)),   # h_n per tile
                pl.BlockSpec((1, e_pad), lambda t: (0, 0)),        # m accumulator
            ],
        ),
        compiler_params=pltpu.CompilerParams(
            dimension_semantics=("arbitrary",),
            vmem_limit_bytes=32 * 1024 * 1024,
        ),
    )(xh, bond_col, prepped["wi"], prepped["bi"])

    # Phase 2: h = relu(h_n + W_m(m) + b_m), independent per node tile.
    h_pad = pl.pallas_call(
        dmpnn_out_kernel,
        out_shape=jax.ShapeDtypeStruct((n_pad, e_pad), jnp.float32),
        grid_spec=pltpu.PrefetchScalarGridSpec(
            num_scalar_prefetch=0,
            grid=(n_tiles,),
            in_specs=[
                pl.BlockSpec((tile_m, e_pad), lambda t: (t, 0)),   # h_n tile
                pl.BlockSpec((1, e_pad), lambda t: (0, 0)),        # m
                pl.BlockSpec((e_pad, e_pad), lambda t: (0, 0)),    # W_m
                pl.BlockSpec((1, e_pad), lambda t: (0, 0)),        # b_m
            ],
            out_specs=pl.BlockSpec((tile_m, e_pad), lambda t: (t, 0)),
        ),
        compiler_params=pltpu.CompilerParams(
            dimension_semantics=("parallel",),
            vmem_limit_bytes=32 * 1024 * 1024,
        ),
    )(hn, m, prepped["wm"], prepped["bm"])

    # TODO(synk): self.batch_norms, drop_ratio and JK are constructed but never
    # used in the PyTorch forward; faithfully omitted.
    return h_pad[:N, :E]


# ---------------------------------------------------------------------------
# Deterministic parameter init (matches PyTorch Linear [out, in] convention)
# ---------------------------------------------------------------------------
def xavier_uniform(key, shape):
    fan_in, fan_out = shape[1], shape[0]
    bound = float(np.sqrt(6.0 / (fan_in + fan_out)))
    return jax.random.uniform(key, shape, jnp.float32, -bound, bound)


def init_params(key, num_layers, emb_dim, num_atom_type, num_bond_type):
    keys = jax.random.split(key, 2 + 4 * num_layers)
    params = {
        "atom_emb": xavier_uniform(keys[0], (num_atom_type, emb_dim)),
        "bond_emb": xavier_uniform(keys[1], (num_bond_type, emb_dim)),
        "layers": [],
    }
    for i in range(num_layers):
        k0, k1, k2, k3 = keys[2 + 4 * i: 6 + 4 * i]
        w_i = xavier_uniform(k0, (emb_dim, 2 * emb_dim))          # Linear(2E -> E)
        b_i = jax.random.uniform(k1, (emb_dim,), jnp.float32, -0.1, 0.1)
        w_m = xavier_uniform(k2, (emb_dim, emb_dim))              # Linear(E -> E)
        b_m = jax.random.uniform(k3, (emb_dim,), jnp.float32, -0.1, 0.1)
        params["layers"].append((w_i, b_i, w_m, b_m))
    return params


# Pure-JAX reference (full layer loop, f32) for the correctness check.
def _reference(params, x_idx, edge_idx, bond_n, num_layers):
    x_emb = params["atom_emb"][x_idx]
    x = x_emb[:, 0] + x_emb[:, 1]
    e_emb = params["bond_emb"][edge_idx]
    h_e = e_emb[:, 0] + e_emb[:, 1]
    h = None
    for i in range(num_layers):
        w_i, b_i, w_m, b_m = params["layers"][i]
        h_n = jax.nn.relu(jnp.concatenate([x, h_e], axis=1) @ w_i.T + b_i)
        m = jnp.sum(bond_n[:, :, None] * h_n[None, :, :], axis=1).sum(axis=0)
        h = jax.nn.relu(h_n + (m @ w_m.T + b_m))
    return h


if __name__ == "__main__":
    num_layers = 3
    emb_dim = 32
    num_atom_type = 20
    num_bond_type = 6
    N = 8      # number of nodes == number of edges (required by torch.cat(dim=1))
    B = 4      # leading dim of bond_n

    key = jax.random.PRNGKey(0)
    kp, kx, ke, kb = jax.random.split(key, 4)

    raw_params = init_params(kp, num_layers, emb_dim, num_atom_type, num_bond_type)
    prepped = prepare_params(raw_params, emb_dim)   # one-time layout prep

    x_idx = jax.random.randint(kx, (N, 2), 0, num_atom_type)
    edge_idx = jax.random.randint(ke, (N, 2), 0, num_bond_type)
    bond_n = jax.random.uniform(kb, (B, N), jnp.float32)

    h = dmpnn_encoder_forward(prepped, x_idx, edge_idx, bond_n, emb_dim)
    h = jax.block_until_ready(h)

    h_ref = _reference(raw_params, x_idx, edge_idx, bond_n, num_layers)
    # bf16 MXU operands -> relaxed tolerance vs. the f32 reference.
    np.testing.assert_allclose(np.asarray(h), np.asarray(h_ref), rtol=2e-2, atol=2e-2)

    print("KERNEL_OK")
</pallas_src>

<mosaic_0001>
module attributes {stable_mosaic.version = 11 : i64} {
  func.func @dmpnn_hn_kernel(%arg0: i32, %arg1: memref<16x128xbf16, #tpu.memory_space<vmem>>, %arg2: memref<16x1xf32, #tpu.memory_space<vmem>>, %arg3: memref<128x128xbf16, #tpu.memory_space<vmem>>, %arg4: memref<1x128xf32, #tpu.memory_space<vmem>>, %arg5: memref<16x128xf32, #tpu.memory_space<vmem>>, %arg6: memref<1x128xf32, #tpu.memory_space<vmem>>) attributes {dimension_semantics = [#tpu.dimension_semantics<arbitrary>], iteration_bounds = array<i64: 1>, scalar_prefetch = 0 : i64, scratch_operands = 0 : i64, tpu.core_type = #tpu.core_type<tc>, window_params = [{transform_indices = @transform_0, window_bounds = array<i64: 16, 128>}, {transform_indices = @transform_1, window_bounds = array<i64: 16, 1>}, {pipeline_mode = #tpu.pipeline_mode<synchronous>, transform_indices = @transform_2, window_bounds = array<i64: 128, 128>}, {pipeline_mode = #tpu.pipeline_mode<synchronous>, transform_indices = @transform_3, window_bounds = array<i64: 1, 128>}, {transform_indices = @transform_4, window_bounds = array<i64: 16, 128>}, {pipeline_mode = #tpu.pipeline_mode<synchronous>, transform_indices = @transform_5, window_bounds = array<i64: 1, 128>}]} {
    %c0_i32 = arith.constant 0 : i32
    %0 = arith.cmpi eq, %arg0, %c0_i32 : i32
    %1 = arith.extui %0 : i1 to i32
    %c0_i32_0 = arith.constant 0 : i32
    %2 = arith.cmpi ne, %1, %c0_i32_0 : i32
    scf.if %2 {
      %cst_16 = arith.constant 0.000000e+00 : f32
      %20 = vector.broadcast %cst_16 : f32 to vector<1x128xf32>
      %c0_17 = arith.constant 0 : index
      %c0_18 = arith.constant 0 : index
      %21 = vector.load %arg6[%c0_17, %c0_18] : memref<1x128xf32, #tpu.memory_space<vmem>>, vector<1x128xf32>
      tpu.vector_store %arg6[%c0_17, %c0_18], %20 {strides = array<i32>} : memref<1x128xf32, #tpu.memory_space<vmem>>, vector<1x128xf32>,
    } else {
    }
    %c0 = arith.constant 0 : index
    %c0_1 = arith.constant 0 : index
    %3 = vector.load %arg1[%c0, %c0_1] : memref<16x128xbf16, #tpu.memory_space<vmem>>, vector<16x128xbf16>
    %c0_2 = arith.constant 0 : index
    %c0_3 = arith.constant 0 : index
    %4 = vector.load %arg3[%c0_2, %c0_3] : memref<128x128xbf16, #tpu.memory_space<vmem>>, vector<128x128xbf16>
    %cst = arith.constant dense<0.000000e+00> : vector<16x128xf32>
    %5 = tpu.matmul %3, %4, %cst {dimension_numbers = #tpu.dot_dimension_numbers<[1], [0], [0], [1], [0, 0, 1, 1], [], []>} : vector<16x128xbf16>, vector<128x128xbf16>, vector<16x128xf32> -> vector<16x128xf32>
    %c0_4 = arith.constant 0 : index
    %c0_5 = arith.constant 0 : index
    %6 = vector.load %arg4[%c0_4, %c0_5] : memref<1x128xf32, #tpu.memory_space<vmem>>, vector<1x128xf32>
    %7 = vector.broadcast %6 : vector<1x128xf32> to vector<16x128xf32>
    %8 = arith.addf %5, %7 : vector<16x128xf32>
    %cst_6 = arith.constant 0.000000e+00 : f32
    %9 = vector.broadcast %cst_6 : f32 to vector<16x128xf32>
    %10 = arith.maximumf %8, %9 : vector<16x128xf32>
    %c0_7 = arith.constant 0 : index
    %c0_8 = arith.constant 0 : index
    %11 = vector.load %arg5[%c0_7, %c0_8] : memref<16x128xf32, #tpu.memory_space<vmem>>, vector<16x128xf32>
    tpu.vector_store %arg5[%c0_7, %c0_8], %10 {strides = array<i32>} : memref<16x128xf32, #tpu.memory_space<vmem>>, vector<16x128xf32>,
    %c0_9 = arith.constant 0 : index
    %c0_10 = arith.constant 0 : index
    %12 = vector.load %arg6[%c0_9, %c0_10] : memref<1x128xf32, #tpu.memory_space<vmem>>, vector<1x128xf32>
    %c0_11 = arith.constant 0 : index
    %c0_12 = arith.constant 0 : index
    %13 = vector.load %arg2[%c0_11, %c0_12] : memref<16x1xf32, #tpu.memory_space<vmem>>, vector<16x1xf32>
    %14 = vector.broadcast %13 : vector<16x1xf32> to vector<16x128xf32>
    %15 = arith.mulf %10, %14 : vector<16x128xf32>
    %cst_13 = arith.constant dense<0.000000e+00> : vector<128xf32>
    %16 = vector.multi_reduction <add>, %15, %cst_13 [0] : vector<16x128xf32> to vector<128xf32>
    %17 = vector.shape_cast %16 : vector<128xf32> to vector<1x128xf32>
    %18 = arith.addf %12, %17 : vector<1x128xf32>
    %c0_14 = arith.constant 0 : index
    %c0_15 = arith.constant 0 : index
    %19 = vector.load %arg6[%c0_14, %c0_15] : memref<1x128xf32, #tpu.memory_space<vmem>>, vector<1x128xf32>
    tpu.vector_store %arg6[%c0_14, %c0_15], %18 {strides = array<i32>} : memref<1x128xf32, #tpu.memory_space<vmem>>, vector<1x128xf32>,
    return
  }
  func.func @transform_0(%arg0: i32) -> (i32, i32) {
    %c0_i32 = arith.constant 0 : i32
    %c0_i32_0 = arith.constant 0 : i32
    return %arg0, %c0_i32 : i32, i32
  }
  func.func @transform_1(%arg0: i32) -> (i32, i32) {
    %c0_i32 = arith.constant 0 : i32
    %c0_i32_0 = arith.constant 0 : i32
    return %arg0, %c0_i32 : i32, i32
  }
  func.func @transform_2(%arg0: i32) -> (i32, i32) {
    %c0_i32 = arith.constant 0 : i32
    %c0_i32_0 = arith.constant 0 : i32
    %c0_i32_1 = arith.constant 0 : i32
    return %c0_i32, %c0_i32_0 : i32, i32
  }
  func.func @transform_3(%arg0: i32) -> (i32, i32) {
    %c0_i32 = arith.constant 0 : i32
    %c0_i32_0 = arith.constant 0 : i32
    %c0_i32_1 = arith.constant 0 : i32
    return %c0_i32, %c0_i32_0 : i32, i32
  }
  func.func @transform_4(%arg0: i32) -> (i32, i32) {
    %c0_i32 = arith.constant 0 : i32
    %c0_i32_0 = arith.constant 0 : i32
    return %arg0, %c0_i32 : i32, i32
  }
  func.func @transform_5(%arg0: i32) -> (i32, i32) {
    %c0_i32 = arith.constant 0 : i32
    %c0_i32_0 = arith.constant 0 : i32
    %c0_i32_1 = arith.constant 0 : i32
    return %c0_i32, %c0_i32_0 : i32, i32
  }
}

module attributes {stable_mosaic.version = 11 : i64} {
  func.func @dmpnn_out_kernel(%arg0: i32, %arg1: memref<16x128xf32, #tpu.memory_space<vmem>>, %arg2: memref<1x128xf32, #tpu.memory_space<vmem>>, %arg3: memref<128x128xf32, #tpu.memory_space<vmem>>, %arg4: memref<1x128xf32, #tpu.memory_space<vmem>>, %arg5: memref<16x128xf32, #tpu.memory_space<vmem>>) attributes {dimension_semantics = [#tpu.dimension_semantics<parallel>], iteration_bounds = array<i64: 1>, scalar_prefetch = 0 : i64, scratch_operands = 0 : i64, tpu.core_type = #tpu.core_type<tc>, window_params = [{transform_indices = @transform_0, window_bounds = array<i64: 16, 128>}, {pipeline_mode = #tpu.pipeline_mode<synchronous>, transform_indices = @transform_1, window_bounds = array<i64: 1, 128>}, {pipeline_mode = #tpu.pipeline_mode<synchronous>, transform_indices = @transform_2, window_bounds = array<i64: 128, 128>}, {pipeline_mode = #tpu.pipeline_mode<synchronous>, transform_indices = @transform_3, window_bounds = array<i64: 1, 128>}, {transform_indices = @transform_4, window_bounds = array<i64: 16, 128>}]} {
    %c0 = arith.constant 0 : index
    %c0_0 = arith.constant 0 : index
    %0 = vector.load %arg2[%c0, %c0_0] : memref<1x128xf32, #tpu.memory_space<vmem>>, vector<1x128xf32>
    %c0_1 = arith.constant 0 : index
    %c0_2 = arith.constant 0 : index
    %1 = vector.load %arg3[%c0_1, %c0_2] : memref<128x128xf32, #tpu.memory_space<vmem>>, vector<128x128xf32>
    %cst = arith.constant dense<0.000000e+00> : vector<1x128xf32>
    %2 = tpu.matmul %0, %1, %cst {dimension_numbers = #tpu.dot_dimension_numbers<[1], [0], [0], [1], [0, 0, 1, 1], [], []>} : vector<1x128xf32>, vector<128x128xf32>, vector<1x128xf32> -> vector<1x128xf32>
    %c0_3 = arith.constant 0 : index
    %c0_4 = arith.constant 0 : index
    %3 = vector.load %arg4[%c0_3, %c0_4] : memref<1x128xf32, #tpu.memory_space<vmem>>, vector<1x128xf32>
    %4 = arith.addf %2, %3 : vector<1x128xf32>
    %c0_5 = arith.constant 0 : index
    %c0_6 = arith.constant 0 : index
    %5 = vector.load %arg1[%c0_5, %c0_6] : memref<16x128xf32, #tpu.memory_space<vmem>>, vector<16x128xf32>
    %6 = vector.broadcast %4 : vector<1x128xf32> to vector<16x128xf32>
    %7 = arith.addf %5, %6 : vector<16x128xf32>
    %cst_7 = arith.constant 0.000000e+00 : f32
    %8 = vector.broadcast %cst_7 : f32 to vector<16x128xf32>
    %9 = arith.maximumf %7, %8 : vector<16x128xf32>
    %c0_8 = arith.constant 0 : index
    %c0_9 = arith.constant 0 : index
    %10 = vector.load %arg5[%c0_8, %c0_9] : memref<16x128xf32, #tpu.memory_space<vmem>>, vector<16x128xf32>
    tpu.vector_store %arg5[%c0_8, %c0_9], %9 {strides = array<i32>} : memref<16x128xf32, #tpu.memory_space<vmem>>, vector<16x128xf32>,
    return
  }
  func.func @transform_0(%arg0: i32) -> (i32, i32) {
    %c0_i32 = arith.constant 0 : i32
    %c0_i32_0 = arith.constant 0 : i32
    return %arg0, %c0_i32 : i32, i32
  }
  func.func @transform_1(%arg0: i32) -> (i32, i32) {
    %c0_i32 = arith.constant 0 : i32
    %c0_i32_0 = arith.constant 0 : i32
    %c0_i32_1 = arith.constant 0 : i32
    return %c0_i32, %c0_i32_0 : i32, i32
  }
  func.func @transform_2(%arg0: i32) -> (i32, i32) {
    %c0_i32 = arith.constant 0 : i32
    %c0_i32_0 = arith.constant 0 : i32
    %c0_i32_1 = arith.constant 0 : i32
    return %c0_i32, %c0_i32_0 : i32, i32
  }
  func.func @transform_3(%arg0: i32) -> (i32, i32) {
    %c0_i32 = arith.constant 0 : i32
    %c0_i32_0 = arith.constant 0 : i32
    %c0_i32_1 = arith.constant 0 : i32
    return %c0_i32, %c0_i32_0 : i32, i32
  }
  func.func @transform_4(%arg0: i32) -> (i32, i32) {
    %c0_i32 = arith.constant 0 : i32
    %c0_i32_0 = arith.constant 0 : i32
    return %arg0, %c0_i32 : i32, i32
  }
}

</mosaic_0001>

<bundles_post_ra>
// kernel: dmpnn_encoder_forward.2
= control target key start
LH: loop header
LB: loop body
LE: loop exit
PB: predicated region body
PF: predicated region fallthrough
CT: control target
= control target key end

     0   :  { %v199_v2 = vmov 0   ;;  %v200_v12 = vmov 0.0   ;;  %s282_s2 = inlined_call_operand.vmem [shape: bf16[128,128], index: 2, kind: input, shape index: {}]   ;;  %s283_s1 = inlined_call_operand.vmem [shape: f32[16,1], index: 1, kind: input, shape index: {}]   ;;  %s284_s3 = inlined_call_operand.vmem [shape: f32[1,128], index: 3, kind: input, shape index: {}]   ;;  %s285_s0 = inlined_call_operand.vmem [shape: bf16[16,128], index: 0, kind: input, shape index: {}]   ;;  %s286_s5 = inlined_call_operand.vmem [shape: f32[1,128], index: 5, kind: output, shape index: {1}]   ;;  %s287_s4 = inlined_call_operand.vmem [shape: f32[16,128], index: 4, kind: output, shape index: {0}]  }
   0x1   :  { %v194_v0 = vld [vmem:[%s282_s2 + $0x38] sm:$0xff]  ;;  %v193_v1 = vld [vmem:[%s282_s2 + $0x30] sm:$0xff]  ;;  %197 = vset.pattern.permute.xlu0 %v199_v2  ;;  %v119_v3 = vld [vmem:[%s283_s1] sm:$0xff]  ;;  %23 = vst [vmem:[%s286_s5] sm:$0x1] %v200_v12 }
   0x2   :  { %100 = vmatpush.bf16.msra.mxu0 %v194_v0  ;;  %123 = vperm.xlu0 %197, %v119_v3   ;;  %v192_v4 = vld [vmem:[%s282_s2 + $0x28] sm:$0xff]  ;;  %v191_v6 = vld [vmem:[%s282_s2 + $0x20] sm:$0xff]  ;;  %v190_v7 = vld [vmem:[%s282_s2 + $0x18] sm:$0xff] }
   0x3   :  { %v120_v5 = vld [vmem:[%s283_s1 + $0x8] sm:$0xff]  ;;  %v189_v8 = vld [vmem:[%s282_s2 + $0x10] sm:$0xff]  ;;  %v187_v10 = vld [vmem:[%s282_s2] sm:$0xff] }
   0x4   :  { %v188_v9 = vld [vmem:[%s282_s2 + $0x8] sm:$0xff]  ;;  %v186_v11 = vld [vmem:[%s285_s0] sm:$0xff] }
   0x5   :  { %v198_v13 = vld [vmem:[%s284_s3] ss:$0 sm:$0xff] }
   0x6   :  { %101 = vmatpush.bf16.msra.mxu0 %v193_v1 }
   0x8   :  { %v118_v30 = vld [vmem:[%s286_s5] sm:$0x1] }
   0xa   :  { %102 = vmatpush.bf16.msra.mxu0 %v192_v4  ;;  %128 = vperm.xlu0 %197, %v120_v5  }
   0xe   :  { %103 = vmatpush.bf16.msra.mxu0 %v191_v6 }
  0x12   :  { %104 = vmatpush.bf16.msra.mxu0 %v190_v7 }
  0x16   :  { %105 = vmatpush.bf16.msra.mxu0 %v189_v8 }
  0x1a   :  { %106 = vmatpush.bf16.msra.mxu0 %v188_v9 }
  0x1e   :  { %107 = vmatpush.bf16.msra.mxu0 %v187_v10 }
  0x21   :  { %108 = vmatmul.bf16.vlgmr.msra.gmra.mxu0 %v186_v11 }
  0x74   :  { %v124_v16 = vpop.permute.xlu0 %123 }
  0x7c   :  { %v129_v21 = vpop.permute.xlu0 %128 }
  0x9e   :  { %v109_v14 = vpop.f32.mrf.mxu0 }
  0x9f   :  { %v110_v15 = vadd.f32 %v198_v13, %v109_v14 }
  0xa1   :  { %v114_v17 = vmax.f32 %v110_v15, 0.0 }
  0xa3   :  { %116 = vst [vmem:[%s287_s4] sm:$0xff] %v114_v17  ;;  %v131_v22 = vmul.f32 %v124_v16, %v114_v17 }
  0xa6   :  { %v111_v18 = vpop.f32.mrf.mxu0 }
  0xa7   :  { %v112_v19 = vadd.f32 %v198_v13, %v111_v18 }
  0xa9   :  { %v115_v20 = vmax.f32 %v112_v19, 0.0 }
  0xab   :  { %117 = vst [vmem:[%s287_s4 + $0x8] sm:$0xff] %v115_v20  ;;  %v132_v23 = vmul.f32 %v129_v21, %v115_v20 }
  0xad   :  { %v133_v24 = vadd.f32 %v132_v23, %v131_v22 }
  0xaf   :  { %v134_v25 = vrot.slane %v133_v24, 4 }
  0xb1   :  { %v135_v26 = vadd.f32 %v134_v25, %v133_v24 }
  0xb3   :  { %v136_v27 = vrot.slane %v135_v26, 2 }
  0xb5   :  { %v137_v28 = vadd.f32 %v136_v27, %v135_v26 }
  0xb7   :  { %v138_v29 = vrot.slane %v137_v28, 1 }
  0xb9   :  { %v139_v31 = vadd.f32 %v138_v29, %v137_v28 }
  0xbb   :  { %v140_v32 = vadd.f32 %v139_v31, %v118_v30 }
  0xbd   :  { %141 = vst [vmem:[%s286_s5] sm:$0x1] %v140_v32 }

// kernel: dmpnn_encoder_forward.3
= control target key start
LH: loop header
LB: loop body
LE: loop exit
PB: predicated region body
PF: predicated region fallthrough
CT: control target
= control target key end

     0   :  { %s159_s2 = inlined_call_operand.vmem [shape: f32[128,128], index: 2, kind: input, shape index: {}]   ;;  %s160_s1 = inlined_call_operand.vmem [shape: f32[1,128], index: 1, kind: input, shape index: {}]   ;;  %s161_s3 = inlined_call_operand.vmem [shape: f32[1,128], index: 3, kind: input, shape index: {}]   ;;  %s162_s0 = inlined_call_operand.vmem [shape: f32[16,128], index: 0, kind: input, shape index: {}]   ;;  %s163_s4 = inlined_call_operand.vmem [shape: f32[16,128], index: 4, kind: output, shape index: {}]  }
   0x1   :  { %v33_v0 = vld [vmem:[%s159_s2 + $0x78] sm:$0xff]  ;;  %v32_v1 = vld [vmem:[%s159_s2 + $0x70] sm:$0xff]  ;;  %v31_v2 = vld [vmem:[%s159_s2 + $0x68] sm:$0xff] }
   0x2   :  { %35 = vmatpush.msra.mxu0 %v33_v0  ;;  %v30_v3 = vld [vmem:[%s159_s2 + $0x60] sm:$0xff]  ;;  %v29_v4 = vld [vmem:[%s159_s2 + $0x58] sm:$0xff]  ;;  %v28_v5 = vld [vmem:[%s159_s2 + $0x50] sm:$0xff] }
   0x3   :  { %v27_v6 = vld [vmem:[%s159_s2 + $0x48] sm:$0xff]  ;;  %v26_v7 = vld [vmem:[%s159_s2 + $0x40] sm:$0xff]  ;;  %v25_v8 = vld [vmem:[%s159_s2 + $0x38] sm:$0xff] }
   0x4   :  { %36 = vmatpush.msra.mxu0 %v32_v1  ;;  %v24_v9 = vld [vmem:[%s159_s2 + $0x30] sm:$0xff]  ;;  %v23_v10 = vld [vmem:[%s159_s2 + $0x28] sm:$0xff]  ;;  %v22_v11 = vld [vmem:[%s159_s2 + $0x20] sm:$0xff] }
   0x5   :  { %v21_v12 = vld [vmem:[%s159_s2 + $0x18] sm:$0xff]  ;;  %v20_v13 = vld [vmem:[%s159_s2 + $0x10] sm:$0xff]  ;;  %v19_v14 = vld [vmem:[%s159_s2 + $0x8] sm:$0xff] }
   0x6   :  { %37 = vmatpush.msra.mxu0 %v31_v2  ;;  %v18_v15 = vld [vmem:[%s159_s2] sm:$0xff]  ;;  %v56_v21 = vld [vmem:[%s162_s0 + $0x8] sm:$0xff] }
   0x7   :  { %v17_v16 = vld [vmem:[%s160_s1] sm:$0x1] }
   0x8   :  { %38 = vmatpush.msra.mxu0 %v30_v3  ;;  %v34_v17 = vld [vmem:[%s161_s3] sm:$0x1] }
   0x9   :  { %v55_v20 = vld [vmem:[%s162_s0] sm:$0xff] }
   0xa   :  { %39 = vmatpush.msra.mxu0 %v29_v4 }
   0xc   :  { %40 = vmatpush.msra.mxu0 %v28_v5 }
   0xe   :  { %41 = vmatpush.msra.mxu0 %v27_v6 }
  0x10   :  { %42 = vmatpush.msra.mxu0 %v26_v7 }
  0x12   :  { %43 = vmatpush.msra.mxu0 %v25_v8 }
  0x14   :  { %44 = vmatpush.msra.mxu0 %v24_v9 }
  0x16   :  { %45 = vmatpush.msra.mxu0 %v23_v10 }
  0x18   :  { %46 = vmatpush.msra.mxu0 %v22_v11 }
  0x1a   :  { %47 = vmatpush.msra.mxu0 %v21_v12 }
  0x1c   :  { %48 = vmatpush.msra.mxu0 %v20_v13 }
  0x1e   :  { %49 = vmatpush.msra.mxu0 %v19_v14 }
  0x20   :  { %50 = vmatpush.msra.mxu0 %v18_v15 }
  0x21   :  { %51 = vmatmul.f32.vlgmr.msra.gmra.mxu0 %v17_v16 }
  0x9e   :  { %v52_v18 = vpop.f32.mrf.mxu0 }
  0x9f   :  { %v53_v19 = vadd.f32 %v52_v18, %v34_v17 }
  0xa1   :  { %v57_v22 = vperm.slane %v53_v19, 0 }
  0xa3   :  { %v58_v23 = vadd.f32 %v57_v22, %v55_v20  ;;  %v59_v24 = vadd.f32 %v57_v22, %v56_v21 }
  0xa5   :  { %v60_v25 = vmax.f32 %v58_v23, 0.0  ;;  %v61_v26 = vmax.f32 %v59_v24, 0.0 }
  0xa7   :  { %62 = vst [vmem:[%s163_s4] sm:$0xff] %v60_v25 }
  0xa8   :  { %63 = vst [vmem:[%s163_s4 + $0x8] sm:$0xff] %v61_v26 }

</bundles_post_ra>
